<compile_context>
chip_gen: v7x
topology: tpu7x:2x2x1
jax: 0.10.0
libtpu: 0.0.40
codegen_flags: <defaults>
</compile_context>

<pallas_src>
import jax
import jax.numpy as jnp
from jax.experimental import pallas as pl
from jax.experimental.pallas import tpu as pltpu

# Max elements per spatial tile: 256K f32 = 1 MiB input / 2 MiB output block,
# so double-buffered in+out ~6 MiB -> safe on v5e (16 MiB scoped) and v7x (64 MiB).
_MAX_TILE_ELEMS = 256 * 1024


def _onoff_kernel(p_ref, x_ref, o_ref):
    # p_ref: SMEM (1,) float32
    # x_ref: VMEM (1, 1, T)
    # o_ref: VMEM (1, 2, T)
    p = p_ref[0].astype(x_ref.dtype)
    t = 2.0 * (x_ref[0, 0, :] - p)
    o_ref[0, 0, :] = jnp.maximum(-t, 0.0).astype(o_ref.dtype)
    o_ref[0, 1, :] = jnp.maximum(t, 0.0).astype(o_ref.dtype)


def on_off_filter(x: jax.Array, p=0.5) -> jax.Array:
    """Pallas TPU implementation of OnOffFilter.forward.

    Args:
      x: (N, 1, H, W) array.
      p: threshold (python float or scalar array; passed via SMEM, no
         recompilation per value).

    Returns:
      (N, 2, H, W) array with the same dtype as x.
    """
    assert x.ndim == 4 and x.shape[1] == 1, "expected NCHW input with C == 1"
    n, _, h, w = x.shape
    hw = h * w

    # Flatten spatial dims to a lane-dense last axis (free reshape, contiguous).
    x2 = x.reshape(n, 1, hw)

    # Spatial tiling: full extent when small (always a legal block shape),
    # otherwise 128-lane-aligned ~1 MiB tiles; ragged last block is masked.
    if hw <= _MAX_TILE_ELEMS:
        tile = hw
    else:
        tile = _MAX_TILE_ELEMS  # multiple of 128
    grid_s = pl.cdiv(hw, tile)

    p_arr = jnp.asarray(p, dtype=jnp.float32).reshape((1,))

    itemsize = jnp.dtype(x.dtype).itemsize
    cost = pl.CostEstimate(
        flops=4 * n * hw,            # sub, mul, 2x max
        transcendentals=0,
        bytes_accessed=3 * n * hw * itemsize,  # 1x read + 2x write
    )

    out_flat = pl.pallas_call(
        _onoff_kernel,
        out_shape=jax.ShapeDtypeStruct((n, 2, hw), x.dtype),
        grid=(n, grid_s),
        in_specs=[
            pl.BlockSpec(memory_space=pltpu.MemorySpace.SMEM),       # p scalar
            pl.BlockSpec((1, 1, tile), lambda i, s: (i, 0, s)),       # x tile
        ],
        out_specs=pl.BlockSpec((1, 2, tile), lambda i, s: (i, 0, s)),
        compiler_params=pltpu.CompilerParams(
            dimension_semantics=("parallel", "parallel"),
            vmem_limit_bytes=32 * 1024 * 1024,
        ),
        cost_estimate=cost,
    )(p_arr, x2)

    return out_flat.reshape(n, 2, h, w)


def _reference(x: jax.Array, p: float = 0.5) -> jax.Array:
    t = 2.0 * (x - p)
    temp_0 = jnp.where(t < 0.0, -t, jnp.zeros_like(t))
    temp_1 = jnp.where(t >= 0.0, t, jnp.zeros_like(t))
    return jnp.concatenate((temp_0, temp_1), axis=1)


if __name__ == "__main__":
    key = jax.random.PRNGKey(0)

    # Primary check: batch=2, channels=1, 16x16 (H*W = 256, single 256-lane tile).
    x = jax.random.uniform(key, (2, 1, 16, 16), dtype=jnp.float32)
    out = jax.block_until_ready(on_off_filter(x, p=0.5))
    ref = _reference(x, p=0.5)
    assert out.shape == (2, 2, 16, 16)
    assert out.dtype == x.dtype
    assert jnp.allclose(out, ref, atol=1e-6, rtol=1e-6)

    # Secondary check: non-128-multiple spatial size (full-extent block path).
    key2 = jax.random.PRNGKey(1)
    x2 = jax.random.uniform(key2, (1, 1, 12, 12), dtype=jnp.float32)
    out2 = jax.block_until_ready(on_off_filter(x2, p=0.25))
    ref2 = _reference(x2, p=0.25)
    assert out2.shape == (1, 2, 12, 12)
    assert jnp.allclose(out2, ref2, atol=1e-6, rtol=1e-6)

    print("KERNEL_OK")
</pallas_src>

<mosaic_0001>
module attributes {stable_mosaic.version = 11 : i64} {
  func.func @_onoff_kernel(%arg0: i32, %arg1: i32, %arg2: memref<1xf32, #tpu.memory_space<smem>>, %arg3: memref<1x1x256xf32, #tpu.memory_space<vmem>>, %arg4: memref<1x2x256xf32, #tpu.memory_space<vmem>>) attributes {dimension_semantics = [#tpu.dimension_semantics<parallel>, #tpu.dimension_semantics<parallel>], iteration_bounds = array<i64: 2, 1>, scalar_prefetch = 0 : i64, scratch_operands = 0 : i64, tpu.core_type = #tpu.core_type<tc>, window_params = [{transform_indices = @transform_0, window_bounds = array<i64: 1>}, {transform_indices = @transform_1, window_bounds = array<i64: 1, 1, 256>}, {transform_indices = @transform_2, window_bounds = array<i64: 1, 2, 256>}]} {
    %c0 = arith.constant 0 : index
    %0 = memref.load %arg2[%c0] : memref<1xf32, #tpu.memory_space<smem>>
    %c0_0 = arith.constant 0 : index
    %c0_1 = arith.constant 0 : index
    %c0_2 = arith.constant 0 : index
    %1 = vector.load %arg3[%c0_0, %c0_1, %c0_2] : memref<1x1x256xf32, #tpu.memory_space<vmem>>, vector<1x1x256xf32>
    %2 = vector.shape_cast %1 : vector<1x1x256xf32> to vector<256xf32>
    %3 = vector.broadcast %0 : f32 to vector<256xf32>
    %4 = arith.subf %2, %3 : vector<256xf32>
    %cst = arith.constant 2.000000e+00 : f32
    %5 = vector.broadcast %cst : f32 to vector<256xf32>
    %6 = arith.mulf %5, %4 : vector<256xf32>
    %cst_3 = arith.constant 0.000000e+00 : f32
    %7 = vector.broadcast %cst_3 : f32 to vector<256xf32>
    %8 = arith.subf %7, %6 : vector<256xf32>
    %cst_4 = arith.constant 0.000000e+00 : f32
    %9 = vector.broadcast %cst_4 : f32 to vector<256xf32>
    %10 = arith.maximumf %8, %9 : vector<256xf32>
    %c0_5 = arith.constant 0 : index
    %c0_6 = arith.constant 0 : index
    %c0_7 = arith.constant 0 : index
    %11 = vector.load %arg4[%c0_5, %c0_6, %c0_7] : memref<1x2x256xf32, #tpu.memory_space<vmem>>, vector<1x1x256xf32>
    %12 = vector.shape_cast %11 : vector<1x1x256xf32> to vector<256xf32>
    %13 = vector.shape_cast %10 : vector<256xf32> to vector<1x1x256xf32>
    tpu.vector_store %arg4[%c0_5, %c0_6, %c0_7], %13 {strides = array<i32>} : memref<1x2x256xf32, #tpu.memory_space<vmem>>, vector<1x1x256xf32>,
    %cst_8 = arith.constant 0.000000e+00 : f32
    %14 = vector.broadcast %cst_8 : f32 to vector<256xf32>
    %15 = arith.maximumf %6, %14 : vector<256xf32>
    %c0_9 = arith.constant 0 : index
    %c1 = arith.constant 1 : index
    %c0_10 = arith.constant 0 : index
    %16 = vector.load %arg4[%c0_9, %c1, %c0_10] : memref<1x2x256xf32, #tpu.memory_space<vmem>>, vector<1x1x256xf32>
    %17 = vector.shape_cast %16 : vector<1x1x256xf32> to vector<256xf32>
    %18 = vector.shape_cast %15 : vector<256xf32> to vector<1x1x256xf32>
    tpu.vector_store %arg4[%c0_9, %c1, %c0_10], %18 {strides = array<i32>} : memref<1x2x256xf32, #tpu.memory_space<vmem>>, vector<1x1x256xf32>,
    return
  }
  func.func @transform_0(%arg0: i32, %arg1: i32) -> i32 {
    %c0_i32 = arith.constant 0 : i32
    %c0_i32_0 = arith.constant 0 : i32
    return %c0_i32 : i32
  }
  func.func @transform_1(%arg0: i32, %arg1: i32) -> (i32, i32, i32) {
    %c0_i32 = arith.constant 0 : i32
    %c0_i32_0 = arith.constant 0 : i32
    return %arg0, %c0_i32, %arg1 : i32, i32, i32
  }
  func.func @transform_2(%arg0: i32, %arg1: i32) -> (i32, i32, i32) {
    %c0_i32 = arith.constant 0 : i32
    %c0_i32_0 = arith.constant 0 : i32
    return %arg0, %c0_i32, %arg1 : i32, i32, i32
  }
}

</mosaic_0001>

<bundles_post_ra>
// kernel: tpu_custom_call.1
= control target key start
LH: loop header
LB: loop body
LE: loop exit
PB: predicated region body
PF: predicated region fallthrough
CT: control target
= control target key end

     0   :  { %s684_s0 = inlined_call_operand.<no memory space> [shape: f32[1], index: 0, kind: input, shape index: {}]   ;;  %s685_s1 = inlined_call_operand.hbm [shape: f32[2,1,256], index: 1, kind: input, shape index: {}]   ;;  %s686_s2 = inlined_call_operand.hbm [shape: f32[2,2,256], index: 2, kind: output, shape index: {}]  }
   0x1   :  { %7 = sst [smem:[#allocation2]] %s684_s0 }
   0x2   :  { %8 = vsyncpa [#allocation4], 0 }
   0x3   :  { %10 = vsyncpa [#allocation4 + $0x1], 0 }
   0x4   :  { %11 = vsyncpa [#allocation5], 0 }
   0x5   :  { %13 = vsyncpa [#allocation5 + $0x1], 0  ;;  %s511_s11 = smov 0   ;;  %s513_s12 = smov 0  }
   0x6   :  { %s515_s13 = smov 0   ;;  %s517_s14 = smov 0  }
   0x7   :  { %s519_s15 = smov 0   ;;  %s521_s16 = smov 0  }
   0x8 LB: > { %s297_s0 = sadd.s32 4294967295, %s489_s16   ;;  %s298_s17 = sadd.s32 4294967294, %s489_s16   ;;  %s489_s16 = sphi %s521_s16, %s19_s16   ;;  %s485_s15 = sphi %s519_s15, %s702_s15   ;;  %s481_s14 = sphi %s517_s14, %s701_s14   ;;  %s477_s13 = sphi %s515_s13, %s700_s13   ;;  %s473_s12 = sphi %s513_s12, %s699_s12   ;;  %s469_s11 = sphi %s511_s11, %s698_s11  }
   0x9   : > { %s31_s18 = sadd.s32 1, %s485_s15  ;;  %s61_s19 = sadd.s32 1, %s477_s13 }
   0xa   : > { %p33_p0 = scmp.ge.s32.totalorder %s31_s18, 2  ;;  %p68_p1 = scmp.ne.s32.totalorder %s477_s13, %s473_s12 }
   0xb   : > { %p69_p2 = scmp.eq.s32.totalorder %s489_s16, 0  ;;  %p74_p3 = scmp.ne.s32.totalorder %s473_s12, %s469_s11 }
   0xc   : > { %s704_s18 = smov (%p33_p0, %s31_s18), 0  ;;  %p75_p5 = scmp.eq.s32.totalorder %s297_s0, 0 }
   0xd   : > { %p552_p4 = por %p69_p2, %p68_p1  ;;  %s56_s21 = ssub.s32 %s485_s15, %s704_s18 }
   0xe   : > { %p100_p6 = scmp.eq.s32.totalorder %s297_s0, 1  ;;  %p59_p7 = scmp.eq.s32.totalorder %s56_s21, 0 }
   0xf   : > { %p558_p8 = por %p75_p5, %p74_p3  ;;  %p106_p10 = scmp.eq.s32.totalorder %s298_s17, 1 }
  0x10   : > { %p562_p9 = por %p100_p6, %p68_p1  ;;  %p327_p13 = scmp.lt.s32.totalorder %s489_s16, 2 }
  0x11   : > { %s567_s24 = scalar_select %p59_p7, %s477_s13, %s61_s19  }
  0x12   : > { %s690_s23 = scalar_select %p562_p9, 1, 0 }
  0x13   : > { %p569_p11 = por %p106_p10, %p74_p3  ;;  %s129_s26 = sand.u32 1, %s477_s13  }
  0x14   : > { %s301_s27 = sshll.u32 %s129_s26, 1  ;;  %s313_s28 = sshll.u32 %s485_s15, 5 }
  0x15   : > { %s691_s25 = scalar_select %p569_p11, 1, 0 }
  0x16   : > { %s580_s3 = scalar_lea.hbm %s685_s1, %s313_s28  ;;  %s133_s4 = scalar_lea.vmem [#allocation3], %s301_s27 }
  0x17   : > { %s143_s5 = sshll.u32 %s133_s4, 4  ;;  %p586_p0 = pnand %p327_p13, %p552_p4  ;;  %s582_s5 = int_to_ptr.vmem [resolvable:$true] %s143_s5 }
  0x18   : > { %s130_s7 = scalar_lea.sflag [#allocation4], %s129_s26  ;;  %s377_s8 = scalar_lea.hbm %s580_s3, 32 }
  0x19   : > { %p378_p3 = scmp.ne.s32.totalorder %s580_s3, %s377_s8  ;;  %p379_p5 = pneg %p586_p0 }
  0x1a   : > { %s382_s0 = scalar_lea.hbm %s685_s1, 64  ;;  %p383_p4 = scmp.lt.u32.totalorder %s580_s3, %s685_s1 }
  0x1b   : > { %p380_p6 = pnand %p379_p5, %p378_p3  ;;  %p384_p10 = scmp.lt.u32.totalorder %s382_s0, %s377_s8 }
  0x1c   : > { %p386_p12 = scmp.lt.u32.totalorder %s377_s8, %s580_s3 }
  0x1d   : > { %p381_p7 = pneg %p380_p6  ;;  %p385_p13 = por %p384_p10, %p383_p4 }
  0x1f   : > { %p387_p1 = por %p386_p12, %p385_p13 }
  0x21   : > { %p388_p2 = pnand %p387_p1, %p381_p7 }
  0x23   : > { %391 = shalt.err (!%p388_p2)
}
  0x24   : > { %s392_s20 = scalar_lea.vmem %s582_s5, 32  ;;  %s491_s21 = smov [#allocation3]  }
  0x25   : > { %p393_p3 = scmp.ne.s32.totalorder %s582_s5, %s392_s20  ;;  %s397_s26 = sshll.u32 %s491_s21, 4  ;;  %s398_s26 = int_to_ptr.vmem [resolvable:$false] %s397_s26 }
  0x26   : > { %s399_s27 = scalar_lea.vmem %s398_s26, 64  ;;  %p400_p9 = scmp.lt.s32.totalorder %s582_s5, %s398_s26 }
  0x27   : > { %p395_p6 = pnand %p393_p3, %p379_p5  ;;  %p401_p4 = scmp.lt.s32.totalorder %s399_s27, %s392_s20 }
  0x29   : > { %p396_p11 = pneg %p395_p6  ;;  %p402_p10 = por %p401_p4, %p400_p9 }
  0x2b   : > { %p403_p12 = pnand %p402_p10, %p396_p11 }
  0x2d   : > { %406 = shalt.err (!%p403_p12)
}
  0x2e   : > { %322 = dma.hbm_to_vmem [thread:$0]  (!%p586_p0), %s580_s3, 32, %s582_s5, %s130_s7  }
  0x2f   : > { %p693_p1 = scmp.lt.s32.totalorder %s489_s16, 3  ;;  %p694_p2 = scmp.ge.s32.totalorder %s489_s16, 1 }
  0x31   : > { %p149_p5 = pnand %p694_p2, %p693_p1 }
  0x32   : > { %s622_s28 = sand.u32 (!%p149_p5), 1, %s473_s12  }
  0x33   : > { %152 = sbr.rel (%p149_p5) target bundleno = 88 (0x58), region = 28  ;;  %s305_s29 = sshll.u32 (!%p149_p5), %s622_s28, 1 }
  0x34   : > { %s155_s30 = scalar_lea.sflag (!%p149_p5), [#allocation4], %s622_s28  ;;  %s158_s4 = scalar_lea.vmem (!%p149_p5), [#allocation3], %s305_s29 }
  0x3a   : > { %460 = dma.done.wait (%p558_p8), %s155_s30, 32  }
  0x3b   : > { %462 = vsyncadd (%p558_p8), %s155_s30, 4294967264  ;;  %s181_s3 = sld [smem:[#allocation2]]  ;;  %s306_s5 = sshll.u32 %s622_s28, 2  ;;  %v182_v0 = vld [vmem:[%s158_s4] sm:$0x3]  ;;  %v188_v2 = vlaneseq }
  0x3c   : > { %s178_s6 = scalar_lea.vmem [#allocation6], %s306_s5  ;;  %s314_s8 = sshll.u32 %s481_s14, 6 }
  0x3d   : > { %vm190_vm0 = vcmp.lt.s32.totalorder %v188_v2, 256  ;;  %s213_s7 = sshll.u32 %s178_s6, 4  ;;  %s637_s10 = scalar_lea.hbm %s686_s2, %s314_s8  ;;  %s632_s7 = int_to_ptr.vmem [resolvable:$true] %s213_s7 }
  0x3e   : > { %s197_s0 = scalar_lea.sflag [#allocation5], %s622_s28  ;;  %s407_s17 = scalar_lea.vmem %s632_s7, 64 }
  0x3f   : > { %p408_p8 = scmp.ne.s32.totalorder %s632_s7, %s407_s17  ;;  %p695_p9 = scmp.ne.s32.totalorder %s690_s23, 0 }
  0x40   : > { %s492_s14 = smov [#allocation6]  }
  0x41   : > { %v183_v1 = vstv %s181_s3  ;;  %p409_p11 = pnand %p408_p8, %p695_p9  ;;  %s411_s19 = sshll.u32 %s492_s14, 4  ;;  %s412_s19 = int_to_ptr.vmem [resolvable:$false] %s411_s19 }
  0x42   : > { %v184_v3 = vsub.f32 %v182_v0, %v183_v1  ;;  %s413_s20 = scalar_lea.vmem %s412_s19, 128  ;;  %p414_p7 = scmp.lt.s32.totalorder %s632_s7, %s412_s19 }
  0x43   : > { %p410_p0 = pneg %p409_p11  ;;  %p415_p13 = scmp.lt.s32.totalorder %s413_s20, %s407_s17 }
  0x44   : > { %v185_v4 = vmul.f32 2.0, %v184_v3 }
  0x45   : > { %p416_p3 = por %p415_p13, %p414_p7 }
  0x46   : > { %v186_v5 = vsub.f32 0.0, %v185_v4  ;;  %v193_v6 = vmax.f32 %v185_v4, 0.0 }
  0x47   : > { %p417_p6 = pnand %p416_p3, %p410_p0 }
  0x48   : > { %v187_v7 = vmax.f32 %v186_v5, 0.0  ;;  %307 = vst.msk [vmem:[%s178_s6 + $0x1] ss:$2 sm:$0x3] %vm190_vm0, %v193_v6 }
  0x4a   : > { %192 = vst.msk [vmem:[%s178_s6] ss:$2 sm:$0x3] %vm190_vm0, %v187_v7 }
  0x4b   : > { %420 = shalt.err (!%p417_p6)
}
  0x4c   : > { %s421_s21 = scalar_lea.hbm %s637_s10, 64  ;;  %s425_s28 = scalar_lea.hbm %s686_s2, 128 }
  0x4d   : > { %p422_p4 = scmp.ne.s32.totalorder %s637_s10, %s421_s21  ;;  %p426_p1 = scmp.lt.u32.totalorder %s637_s10, %s686_s2 }
  0x4e   : > { %p427_p2 = scmp.lt.u32.totalorder %s425_s28, %s421_s21  ;;  %p429_p8 = scmp.lt.u32.totalorder %s421_s21, %s637_s10 }
  0x4f   : > { %p423_p10 = pnand %p422_p4, %p695_p9 }
  0x50   : > { %p428_p5 = por %p427_p2, %p426_p1 }
  0x51   : > { %p424_p12 = pneg %p423_p10 }
  0x52   : > { %p430_p11 = por %p429_p8, %p428_p5 }
  0x54   : > { %p431_p0 = pnand %p430_p11, %p424_p12 }
  0x56   : > { %434 = shalt.err (!%p431_p0)
}
  0x57   : > { %317 = dma.vmem_to_hbm [thread:$0]  (%p695_p9), %s632_s7, 64, %s637_s10, %s197_s0  }
  0x58 PF: > { %s225_s4 = sand.u32 1, %s469_s11   ;;  %p696_p7 = scmp.ne.s32.totalorder %s691_s25, 0 }
  0x59   : > { %p697_p13 = scmp.ge.s32.totalorder %s489_s16, 2  ;;  %s226_s3 = scalar_lea.sflag [#allocation5], %s225_s4 }
  0x5b   : > { %p324_p3 = pnand %p697_p13, %p696_p7 }
  0x5d   : > { %464 = dma.done.wait (!%p324_p3), %s226_s3, 64  }
  0x5e   : > { %466 = vsyncadd (!%p324_p3), %s226_s3, 4294967232  ;;  %s19_s16 = sadd.s32 1, %s489_s16   ;;  %s698_s11 = smov %s473_s12 }
  0x5f   : > { %p16_p6 = scmp.ge.s32.totalorder %s19_s16, 4   ;;  %s699_s12 = smov %s477_s13 }
  0x60   : > { %s700_s13 = smov %s567_s24  ;;  %s701_s14 = smov %s485_s15 }
  0x61   : > { %s702_s15 = smov %s704_s18  ;;  %18 = sbr.rel (!%p16_p6) target bundleno = 8 (0x8), region = 74 }
  0x68   :  { %231 = vsyncpa [#allocation4], 1 }
  0x69   :  { %233 = vsyncpa [#allocation4 + $0x1], 1 }
  0x6a   :  { %234 = vsyncpa [#allocation5], 1 }
  0x6b   :  { %236 = vsyncpa [#allocation5 + $0x1], 1 }

</bundles_post_ra>
